<compile_context>
chip_gen: v6e
topology: v6e:2x2x1
jax: 0.10.0
libtpu: 0.0.40
codegen_flags: <defaults>
</compile_context>

<pallas_src>
import jax
import jax.numpy as jnp
from jax.experimental import pallas as pl
from jax.experimental.pallas import tpu as pltpu

NUM_EMB_ROWS = 796   # embedding_size = [(796, 8)]
EMB_DIM = 8
NUM_NUM = 33         # num_numerical_cols
HIDDEN = 2           # layers = [2]
OUT = 2              # output_size
BN_EPS = 1e-5
TILE_B = 1024        # batch tile (rows per grid step)

# Two-level embedding-lookup decomposition: idx = 128*hi + lo
LANE = 128                     # low-index one-hot width (one lane group)
NGRP = 8                       # ceil(796 / 128) padded to 8 groups (1024 rows)
EMB_PAD_ROWS = NGRP * LANE     # 1024
PCOLS = NGRP * HIDDEN          # 16 columns of the regrouped table / P


def _location_encoder_kernel(x_ref, e2_ref, w1n_ref, consts_ref, o_ref):
    x = x_ref[...]                                   # [TB, 1+NUM_NUM] f32
    tb = x.shape[0]

    # ---- categorical path: two-level one-hot gather of emb_f = E @ W1_emb --
    # (index stored as float, truncated toward zero like .type(LongTensor))
    idx = x[:, 0:1].astype(jnp.int32)                # [TB, 1]
    lo = jnp.bitwise_and(idx, LANE - 1)              # idx % 128
    hi = jnp.right_shift(idx, 7)                     # idx // 128  (0..6)

    lane_iota = jax.lax.broadcasted_iota(jnp.int32, (tb, LANE), 1)
    onehot_lo = (lane_iota == lo).astype(jnp.float32)            # [TB, 128]

    # P[b, 2h+c] = emb_pad[h*128 + lo_b, c]
    p = jnp.dot(onehot_lo, e2_ref[...],
                preferred_element_type=jnp.float32)              # [TB, 16]

    col_iota = jax.lax.broadcasted_iota(jnp.int32, (tb, PCOLS), 1)
    grp_mask = (jnp.right_shift(col_iota, 1) == hi).astype(jnp.float32)

    # packed constants: rows [0:16)=R (group/channel unpack), [16:18)=W2',
    #                   [18]=b1', [19]=b2'   (HIDDEN == OUT == 2)
    r_mat = consts_ref[0:PCOLS, :]                               # [16, OUT]
    w2 = consts_ref[PCOLS:PCOLS + HIDDEN, :]                     # [HIDDEN, OUT]
    b1 = consts_ref[PCOLS + HIDDEN:PCOLS + HIDDEN + 1, :]        # [1, HIDDEN]
    b2 = consts_ref[PCOLS + HIDDEN + 1:PCOLS + HIDDEN + 2, :]    # [1, OUT]

    cat_h = jnp.dot(p * grp_mask, r_mat,
                    preferred_element_type=jnp.float32)          # [TB, HIDDEN]

    # ---- numerical path: BatchNorm folded into W1n'/b1'; index column hits a
    #      zero row of w1n_ref so no lane-slice of x is needed ---------------
    num_h = jnp.dot(x, w1n_ref[...],
                    preferred_element_type=jnp.float32)          # [TB, HIDDEN]

    h = jnp.maximum(cat_h + num_h + b1, 0.0)         # Linear(41->2) + ReLU
    # (post-ReLU BatchNorm1d(2) folded into W2'/b2'; dropouts identity in eval)
    o_ref[...] = jnp.dot(h, w2, preferred_element_type=jnp.float32) + b2


def location_encoder(x, params, *, tile_b=TILE_B):
    """x: [B, 1 + NUM_NUM] float32; returns [B, OUT] float32 (eval mode)."""
    emb, bnn, w1e, w1n, b1, bn1, w2, b2 = params
    B = x.shape[0]
    x = x.astype(jnp.float32)

    # ---- host-side constant folding (eval mode, pure affine algebra) -------
    gamma, beta, mean, var = bnn[0], bnn[1], bnn[2], bnn[3]
    scale_n = gamma * jax.lax.rsqrt(var + BN_EPS)              # [NUM_NUM]
    w1n_f = w1n * scale_n[:, None]                             # [NUM_NUM, HIDDEN]
    b1_f = b1 + (beta - mean * scale_n) @ w1n                  # [1, HIDDEN]
    # zero row for the (float) index column -> num path is just x @ w1n_full
    w1n_full = jnp.concatenate(
        [jnp.zeros((1, HIDDEN), jnp.float32), w1n_f], axis=0)  # [1+NUM_NUM, H]

    # folded + regrouped embedding table: E2[l, 2h+c] = emb_pad[h*128 + l, c]
    emb_f = emb @ w1e                                          # [796, HIDDEN]
    emb_pad = jnp.pad(emb_f, ((0, EMB_PAD_ROWS - NUM_EMB_ROWS), (0, 0)))
    e2 = emb_pad.reshape(NGRP, LANE, HIDDEN).transpose(1, 0, 2) \
                .reshape(LANE, PCOLS)                          # [128, 16]

    g1, bt1, m1, v1 = bn1[0], bn1[1], bn1[2], bn1[3]
    s1 = g1 * jax.lax.rsqrt(v1 + BN_EPS)                       # [HIDDEN]
    w2_f = w2 * s1[:, None]                                    # [HIDDEN, OUT]
    b2_f = b2 + (bt1 - m1 * s1) @ w2                           # [1, OUT]

    # fixed unpack matrix R[2h+c, c'] = (c == c')
    r_mat = jnp.tile(jnp.eye(HIDDEN, dtype=jnp.float32), (NGRP, 1))  # [16, OUT]
    consts = jnp.concatenate([r_mat, w2_f, b1_f, b2_f], axis=0)      # [20, OUT]

    # ---- batch tiling -------------------------------------------------------
    tb = min(tile_b, max(B, 8))
    tb = ((tb + 7) // 8) * 8                        # keep sublane-aligned tiles
    n_tiles = pl.cdiv(B, tb)
    padded_B = n_tiles * tb
    if padded_B != B:
        x = jnp.pad(x, ((0, padded_B - B), (0, 0)))  # idx 0 is a valid emb row

    out = pl.pallas_call(
        _location_encoder_kernel,
        out_shape=jax.ShapeDtypeStruct((padded_B, OUT), jnp.float32),
        grid_spec=pltpu.PrefetchScalarGridSpec(
            num_scalar_prefetch=0,
            grid=(n_tiles,),
            in_specs=[
                pl.BlockSpec((tb, 1 + NUM_NUM), lambda i: (i, 0)),
                pl.BlockSpec((LANE, PCOLS), lambda i: (0, 0)),
                pl.BlockSpec((1 + NUM_NUM, HIDDEN), lambda i: (0, 0)),
                pl.BlockSpec((PCOLS + HIDDEN + 2, OUT), lambda i: (0, 0)),
            ],
            out_specs=pl.BlockSpec((tb, OUT), lambda i: (i, 0)),
        ),
        compiler_params=pltpu.CompilerParams(
            dimension_semantics=("parallel",),
            vmem_limit_bytes=32 * 1024 * 1024),
    )(x, e2, w1n_full, consts)

    return out[:B]


def init_params(key):
    ks = jax.random.split(key, 8)
    # Embedding table [796, 8]  (nn.Embedding init ~ N(0, 1))
    emb = jax.random.normal(ks[0], (NUM_EMB_ROWS, EMB_DIM), jnp.float32)

    # BatchNorm1d(33): rows = [gamma, beta, running_mean, running_var]
    bnn = jnp.stack([
        1.0 + 0.1 * jax.random.normal(ks[1], (NUM_NUM,), jnp.float32),
        0.1 * jax.random.normal(ks[2], (NUM_NUM,), jnp.float32),
        0.1 * jax.random.normal(ks[3], (NUM_NUM,), jnp.float32),
        0.5 + jax.random.uniform(ks[4], (NUM_NUM,), jnp.float32),
    ], axis=0)                                                  # [4, 33]

    # Linear(41 -> 2): stored as [41, 2] = weight.T, split emb / numeric
    in1 = EMB_DIM + NUM_NUM
    bound1 = 1.0 / jnp.sqrt(in1)
    w1 = jax.random.uniform(ks[5], (in1, HIDDEN), jnp.float32, -bound1, bound1)
    w1e = w1[:EMB_DIM, :]                       # [8, 2]
    w1n = w1[EMB_DIM:, :]                       # [33, 2]
    b1 = jax.random.uniform(ks[6], (1, HIDDEN), jnp.float32, -bound1, bound1)

    # BatchNorm1d(2): rows = [gamma, beta, running_mean, running_var]
    bn1 = jnp.stack([
        jnp.ones((HIDDEN,), jnp.float32),
        jnp.zeros((HIDDEN,), jnp.float32),
        jnp.zeros((HIDDEN,), jnp.float32),
        jnp.ones((HIDDEN,), jnp.float32),
    ], axis=0)                                  # [4, 2]

    # Linear(2 -> 2)
    bound2 = 1.0 / jnp.sqrt(HIDDEN)
    k7, k8 = jax.random.split(ks[7])
    w2 = jax.random.uniform(k7, (HIDDEN, OUT), jnp.float32, -bound2, bound2)
    b2 = jax.random.uniform(k8, (1, OUT), jnp.float32, -bound2, bound2)

    return (emb, bnn, w1e, w1n, b1, bn1, w2, b2)


def _reference_forward(x, params):
    """Pure-JAX eval-mode replica of the PyTorch forward (no folding)."""
    emb, bnn, w1e, w1n, b1, bn1, w2, b2 = params
    idx = x[:, 0].astype(jnp.int32)
    e = emb[idx]                                                     # [B, 8]
    xn = x[:, 1:]
    xn = (xn - bnn[2]) * jax.lax.rsqrt(bnn[3] + BN_EPS) * bnn[0] + bnn[1]
    h = e @ w1e + xn @ w1n + b1
    h = jnp.maximum(h, 0.0)
    h = (h - bn1[2]) * jax.lax.rsqrt(bn1[3] + BN_EPS) * bn1[0] + bn1[1]
    return h @ w2 + b2


if __name__ == "__main__":
    key = jax.random.PRNGKey(0)
    k_params, k_cat, k_num = jax.random.split(key, 3)

    params = init_params(k_params)

    B = 8
    # column 0: categorical index in [0, 796) stored as float; cols 1..33: numeric
    x_cat = jax.random.randint(k_cat, (B, 1), 0, NUM_EMB_ROWS).astype(jnp.float32)
    x_num = jax.random.normal(k_num, (B, NUM_NUM), jnp.float32)
    x = jnp.concatenate([x_cat, x_num], axis=1)          # [8, 34]

    out = jax.jit(location_encoder)(x, params)
    out = jax.block_until_ready(out)
    assert out.shape == (B, OUT) and out.dtype == jnp.float32

    ref = _reference_forward(x, params)
    assert jnp.allclose(out, ref, rtol=1e-4, atol=1e-4), \
        f"max abs err {jnp.max(jnp.abs(out - ref))}"
    print("KERNEL_OK")
</pallas_src>

<mosaic_0001>
module attributes {stable_mosaic.version = 11 : i64} {
  func.func @_location_encoder_kernel(%arg0: i32, %arg1: memref<8x34xf32, #tpu.memory_space<vmem>>, %arg2: memref<128x16xf32, #tpu.memory_space<vmem>>, %arg3: memref<34x2xf32, #tpu.memory_space<vmem>>, %arg4: memref<20x2xf32, #tpu.memory_space<vmem>>, %arg5: memref<8x2xf32, #tpu.memory_space<vmem>>) attributes {dimension_semantics = [#tpu.dimension_semantics<parallel>], iteration_bounds = array<i64: 1>, scalar_prefetch = 0 : i64, scratch_operands = 0 : i64, tpu.core_type = #tpu.core_type<tc>, window_params = [{transform_indices = @transform_0, window_bounds = array<i64: 8, 34>}, {pipeline_mode = #tpu.pipeline_mode<synchronous>, transform_indices = @transform_1, window_bounds = array<i64: 128, 16>}, {pipeline_mode = #tpu.pipeline_mode<synchronous>, transform_indices = @transform_2, window_bounds = array<i64: 34, 2>}, {pipeline_mode = #tpu.pipeline_mode<synchronous>, transform_indices = @transform_3, window_bounds = array<i64: 20, 2>}, {transform_indices = @transform_4, window_bounds = array<i64: 8, 2>}]} {
    %c0 = arith.constant 0 : index
    %c0_0 = arith.constant 0 : index
    %0 = vector.load %arg1[%c0, %c0_0] : memref<8x34xf32, #tpu.memory_space<vmem>>, vector<8x34xf32>
    %1 = vector.extract_strided_slice %0 {offsets = [0, 0], sizes = [8, 1], strides = [1, 1]} : vector<8x34xf32> to vector<8x1xf32>
    %2 = arith.fptosi %1 : vector<8x1xf32> to vector<8x1xi32>
    %c127_i32 = arith.constant 127 : i32
    %3 = vector.broadcast %c127_i32 : i32 to vector<8x1xi32>
    %4 = arith.andi %2, %3 : vector<8x1xi32>
    %c7_i32 = arith.constant 7 : i32
    %5 = vector.broadcast %c7_i32 : i32 to vector<8x1xi32>
    %6 = arith.shrsi %2, %5 : vector<8x1xi32>
    %7 = tpu.iota {dimensions = array<i32: 1>} : vector<8x128xi32>
    %8 = vector.broadcast %4 : vector<8x1xi32> to vector<8x128xi32>
    %9 = arith.cmpi eq, %7, %8 : vector<8x128xi32>
    %10 = arith.extui %9 : vector<8x128xi1> to vector<8x128xi32>
    %11 = arith.sitofp %10 : vector<8x128xi32> to vector<8x128xf32>
    %c0_1 = arith.constant 0 : index
    %c0_2 = arith.constant 0 : index
    %12 = vector.load %arg2[%c0_1, %c0_2] : memref<128x16xf32, #tpu.memory_space<vmem>>, vector<128x16xf32>
    %cst = arith.constant dense<0.000000e+00> : vector<8x16xf32>
    %13 = tpu.matmul %11, %12, %cst {dimension_numbers = #tpu.dot_dimension_numbers<[1], [0], [0], [1], [0, 0, 1, 1], [], []>} : vector<8x128xf32>, vector<128x16xf32>, vector<8x16xf32> -> vector<8x16xf32>
    %14 = tpu.iota {dimensions = array<i32: 1>} : vector<8x16xi32>
    %c1_i32 = arith.constant 1 : i32
    %15 = vector.broadcast %c1_i32 : i32 to vector<8x16xi32>
    %16 = arith.shrsi %14, %15 : vector<8x16xi32>
    %17 = vector.broadcast %6 : vector<8x1xi32> to vector<8x16xi32>
    %18 = arith.cmpi eq, %16, %17 : vector<8x16xi32>
    %19 = arith.extui %18 : vector<8x16xi1> to vector<8x16xi32>
    %20 = arith.sitofp %19 : vector<8x16xi32> to vector<8x16xf32>
    %c0_3 = arith.constant 0 : index
    %c0_4 = arith.constant 0 : index
    %21 = vector.load %arg4[%c0_3, %c0_4] : memref<20x2xf32, #tpu.memory_space<vmem>>, vector<16x2xf32>
    %c16 = arith.constant 16 : index
    %c0_5 = arith.constant 0 : index
    %22 = vector.load %arg4[%c16, %c0_5] : memref<20x2xf32, #tpu.memory_space<vmem>>, vector<2x2xf32>
    %c18 = arith.constant 18 : index
    %c0_6 = arith.constant 0 : index
    %23 = vector.load %arg4[%c18, %c0_6] : memref<20x2xf32, #tpu.memory_space<vmem>>, vector<1x2xf32>
    %c19 = arith.constant 19 : index
    %c0_7 = arith.constant 0 : index
    %24 = vector.load %arg4[%c19, %c0_7] : memref<20x2xf32, #tpu.memory_space<vmem>>, vector<1x2xf32>
    %25 = arith.mulf %13, %20 : vector<8x16xf32>
    %cst_8 = arith.constant dense<0.000000e+00> : vector<8x2xf32>
    %26 = tpu.matmul %25, %21, %cst_8 {dimension_numbers = #tpu.dot_dimension_numbers<[1], [0], [0], [1], [0, 0, 1, 1], [], []>} : vector<8x16xf32>, vector<16x2xf32>, vector<8x2xf32> -> vector<8x2xf32>
    %c0_9 = arith.constant 0 : index
    %c0_10 = arith.constant 0 : index
    %27 = vector.load %arg3[%c0_9, %c0_10] : memref<34x2xf32, #tpu.memory_space<vmem>>, vector<34x2xf32>
    %cst_11 = arith.constant dense<0.000000e+00> : vector<8x2xf32>
    %28 = tpu.matmul %0, %27, %cst_11 {dimension_numbers = #tpu.dot_dimension_numbers<[1], [0], [0], [1], [0, 0, 1, 1], [], []>} : vector<8x34xf32>, vector<34x2xf32>, vector<8x2xf32> -> vector<8x2xf32>
    %29 = arith.addf %26, %28 : vector<8x2xf32>
    %30 = vector.broadcast %23 : vector<1x2xf32> to vector<8x2xf32>
    %31 = arith.addf %29, %30 : vector<8x2xf32>
    %cst_12 = arith.constant 0.000000e+00 : f32
    %32 = vector.broadcast %cst_12 : f32 to vector<8x2xf32>
    %33 = arith.maximumf %31, %32 : vector<8x2xf32>
    %cst_13 = arith.constant dense<0.000000e+00> : vector<8x2xf32>
    %34 = tpu.matmul %33, %22, %cst_13 {dimension_numbers = #tpu.dot_dimension_numbers<[1], [0], [0], [1], [0, 0, 1, 1], [], []>} : vector<8x2xf32>, vector<2x2xf32>, vector<8x2xf32> -> vector<8x2xf32>
    %35 = vector.broadcast %24 : vector<1x2xf32> to vector<8x2xf32>
    %36 = arith.addf %34, %35 : vector<8x2xf32>
    %c0_14 = arith.constant 0 : index
    %c0_15 = arith.constant 0 : index
    %37 = vector.load %arg5[%c0_14, %c0_15] : memref<8x2xf32, #tpu.memory_space<vmem>>, vector<8x2xf32>
    tpu.vector_store %arg5[%c0_14, %c0_15], %36 {strides = array<i32>} : memref<8x2xf32, #tpu.memory_space<vmem>>, vector<8x2xf32>,
    return
  }
  func.func @transform_0(%arg0: i32) -> (i32, i32) {
    %c0_i32 = arith.constant 0 : i32
    %c0_i32_0 = arith.constant 0 : i32
    return %arg0, %c0_i32 : i32, i32
  }
  func.func @transform_1(%arg0: i32) -> (i32, i32) {
    %c0_i32 = arith.constant 0 : i32
    %c0_i32_0 = arith.constant 0 : i32
    %c0_i32_1 = arith.constant 0 : i32
    return %c0_i32, %c0_i32_0 : i32, i32
  }
  func.func @transform_2(%arg0: i32) -> (i32, i32) {
    %c0_i32 = arith.constant 0 : i32
    %c0_i32_0 = arith.constant 0 : i32
    %c0_i32_1 = arith.constant 0 : i32
    return %c0_i32, %c0_i32_0 : i32, i32
  }
  func.func @transform_3(%arg0: i32) -> (i32, i32) {
    %c0_i32 = arith.constant 0 : i32
    %c0_i32_0 = arith.constant 0 : i32
    %c0_i32_1 = arith.constant 0 : i32
    return %c0_i32, %c0_i32_0 : i32, i32
  }
  func.func @transform_4(%arg0: i32) -> (i32, i32) {
    %c0_i32 = arith.constant 0 : i32
    %c0_i32_0 = arith.constant 0 : i32
    return %arg0, %c0_i32 : i32, i32
  }
}

</mosaic_0001>

<bundles_post_ra>
// kernel: location_encoder.1
= control target key start
LH: loop header
LB: loop body
LE: loop exit
PB: predicated region body
PF: predicated region fallthrough
CT: control target
= control target key end

     0   :  { %v482_v0 = vmov 0   ;;  %v483_v2 = vmov 0.0   ;;  %vm484_vm0 = vmmov 0   ;;  %vm137_vm1 = vcmask 1041408   ;;  %s630_s0 = inlined_call_operand.vmem [shape: f32[8,34], index: 0, kind: input, shape index: {}]   ;;  %s631_s1 = inlined_call_operand.vmem [shape: f32[128,16], index: 1, kind: input, shape index: {}]   ;;  %s632_s2 = inlined_call_operand.vmem [shape: f32[34,2], index: 2, kind: input, shape index: {}]   ;;  %s633_s3 = inlined_call_operand.vmem [shape: f32[20,2], index: 3, kind: input, shape index: {}]   ;;  %s634_s4 = inlined_call_operand.vmem [shape: f32[8,2], index: 4, kind: output, shape index: {}]  }
   0x1   :  { %481 = vset.pattern.permute.xlu0 %v482_v0  ;;  %v17_v1 = vld [vmem:[%s630_s0] sm:$0xff]  ;;  %415 = vmatprep.subr.mxu0 %v483_v2  ;;  %v44_v3 = vld [vmem:[%s631_s1 + $0x78] sm:$0xff]  ;;  %v43_v4 = vld [vmem:[%s631_s1 + $0x70] sm:$0xff]  ;;  %vm133_vm2 = vcmask 277504   ;;  %v21_v29 = vlaneseq  ;;  %v485_v32 = vmov 1.0   ;;  %vm211_vm5 = vcmask 130048  }
   0x2   :  { %v475_v5 = vtrunc.f32 %v17_v1  ;;  %416 = vmatpush3.msra.mxu0 %v44_v3  ;;  %450 = vmatprep.subr.mxu1 %v483_v2  ;;  %v42_v6 = vld [vmem:[%s631_s1 + $0x68] sm:$0xff]  ;;  %v41_v8 = vld [vmem:[%s631_s1 + $0x60] sm:$0xff]  ;;  %v40_v10 = vld [vmem:[%s631_s1 + $0x58] sm:$0xff]  ;;  %vm295_vm6 = vcmask 15360  }
   0x3   :  { %417 = vmatprep.subr.mxu0 %v483_v2  ;;  %447 = vmatprep.mubr.msk.f32.mxu0 %vm484_vm0, %v483_v2  ;;  %v39_v12 = vld [vmem:[%s631_s1 + $0x50] sm:$0xff]  ;;  %v132_v13 = vld [vmem:[%s632_s2 + $0x20] sm:$0x3]  ;;  %v131_v14 = vld [vmem:[%s632_s2 + $0x18] sm:$0xff]  ;;  %v22_v30 = vand.u32 127, %v21_v29 }
   0x4   :  { %v476_v7 = vcvt.f32.s32 %v475_v5  ;;  %418 = vmatpush3.msra.mxu0 %v43_v4  ;;  %460 = vmatprep.mubr.msk.f32.mxu1 %vm484_vm0, %v483_v2  ;;  %v38_v15 = vld [vmem:[%s631_s1 + $0x48] sm:$0xff]  ;;  %v130_v16 = vld [vmem:[%s632_s2 + $0x10] sm:$0xff]  ;;  %v37_v17 = vld [vmem:[%s631_s1 + $0x40] sm:$0xff] }
   0x5   :  { %419 = vmatprep.subr.mxu0 %v483_v2  ;;  %451 = vmatpush3.msk.msra.mxu1 %vm137_vm1, %v132_v13  ;;  %v129_v18 = vld [vmem:[%s632_s2 + $0x8] sm:$0xff]  ;;  %v36_v19 = vld [vmem:[%s631_s1 + $0x38] sm:$0xff]  ;;  %v128_v20 = vld [vmem:[%s632_s2] sm:$0xff]  ;;  %v115_v36 = vshra.s32 %v22_v30, 1 }
   0x6   :  { %v19_v9 = vand.u32 127, %v476_v7  ;;  %420 = vmatpush3.msra.mxu0 %v42_v6  ;;  %v20_v11 = vshra.s32 %v476_v7, 7  ;;  %452 = vmatprep.subr.mxu1 %v483_v2  ;;  %v35_v21 = vld [vmem:[%s631_s1 + $0x30] sm:$0xff]  ;;  %v34_v22 = vld [vmem:[%s631_s1 + $0x28] sm:$0xff]  ;;  %v33_v24 = vld [vmem:[%s631_s1 + $0x20] sm:$0xff] }
   0x7   :  { %421 = vmatprep.subr.mxu0 %v483_v2  ;;  %453 = vmatpush3.msra.mxu1 %v131_v14  ;;  %v123_v23 = vld [vmem:[%s633_s3 + $0x8] sm:$0xff]  ;;  %v32_v25 = vld [vmem:[%s631_s1 + $0x18] sm:$0xff]  ;;  %v31_v26 = vld [vmem:[%s631_s1 + $0x10] sm:$0xff] }
   0x8   :  { %24 = vperm.xlu0 %481, %v19_v9   ;;  %422 = vmatpush3.msra.mxu0 %v41_v8  ;;  %v30_v27 = vld [vmem:[%s631_s1 + $0x8] sm:$0xff]  ;;  %v29_v28 = vld [vmem:[%s631_s1] sm:$0xff]  ;;  %v124_v42 = vld [vmem:[%s633_s3 + $0x10] sm:$0x3] }
   0x9   :  { %423 = vmatprep.subr.mxu0 %v483_v2  ;;  %454 = vmatprep.subr.mxu1 %v483_v2  ;;  %v122_v33 = vld [vmem:[%s633_s3] sm:$0xff]  ;;  %v383_v43 = vld [vmem:[%s633_s3 + $0x12] ss:$0 sm:$0xff]  ;;  %v384_v49 = vld [vmem:[%s633_s3 + $0x13] ss:$0 sm:$0xff] }
   0xa   :  { %424 = vmatpush3.msra.mxu0 %v40_v10  ;;  %455 = vmatpush3.msra.mxu1 %v130_v16 }
   0xb   :  { %425 = vmatprep.subr.mxu0 %v483_v2  ;;  %456 = vmatprep.subr.mxu1 %v483_v2 }
   0xc   :  { %117 = vperm.xlu0 %481, %v20_v11   ;;  %426 = vmatpush3.msra.mxu0 %v39_v12 }
   0xd   :  { %427 = vmatprep.subr.mxu0 %v483_v2  ;;  %457 = vmatpush3.msra.mxu1 %v129_v18 }
   0xe   :  { %428 = vmatpush3.msra.mxu0 %v38_v15  ;;  %458 = vmatprep.subr.mxu1 %v483_v2 }
   0xf   :  { %429 = vmatprep.subr.mxu0 %v483_v2  ;;  %459 = vmatpush3.msra.mxu1 %v128_v20 }
  0x10   :  { %430 = vmatpush3.msra.mxu0 %v37_v17  ;;  %461 = vmatmul.mubr.msk.f32.vlgmr.msra.gmra.mxu1 %vm133_vm2, %v17_v1 }
  0x11   :  { %431 = vmatprep.subr.mxu0 %v483_v2  ;;  %463 = vmatprep.subr.mxu1 %v483_v2 }
  0x12   :  { %432 = vmatpush3.msra.mxu0 %v36_v19  ;;  %464 = vmatpush3.msra.mxu1 %v123_v23 }
  0x13   :  { %433 = vmatprep.subr.mxu0 %v483_v2  ;;  %465 = vmatprep.subr.mxu1 %v483_v2 }
  0x14   :  { %434 = vmatpush3.msra.mxu0 %v35_v21  ;;  %467 = vmatprep.mubr.msk.f32.mxu1 %vm484_vm0, %v483_v2 }
  0x15   :  { %435 = vmatprep.subr.mxu0 %v483_v2  ;;  %466 = vmatpush3.msra.mxu1 %v122_v33 }
  0x16   :  { %436 = vmatpush3.msra.mxu0 %v34_v22  ;;  %470 = vmatprep.subr.mxu1 %v483_v2 }
  0x17   :  { %437 = vmatprep.subr.mxu0 %v483_v2 }
  0x18   :  { %438 = vmatpush3.msra.mxu0 %v33_v24 }
  0x19   :  { %439 = vmatprep.subr.mxu0 %v483_v2 }
  0x1a   :  { %440 = vmatpush3.msra.mxu0 %v32_v25 }
  0x1b   :  { %441 = vmatprep.subr.mxu0 %v483_v2 }
  0x1c   :  { %442 = vmatpush3.msra.mxu0 %v31_v26 }
  0x1d   :  { %443 = vmatprep.subr.mxu0 %v483_v2 }
  0x1e   :  { %444 = vmatpush3.msra.mxu0 %v30_v27 }
  0x1f   :  { %445 = vmatprep.subr.mxu0 %v483_v2 }
  0x20   :  { %446 = vmatpush3.msra.mxu0 %v29_v28 }
  0x83   :  { %v25_v31 = vpop.permute.xlu0 %24 }
  0x84   :  { %vm26_vm3 = vcmp.eq.s32.totalorder %v22_v30, %v25_v31 }
  0x85   :  { %448 = vmatmul.mubr.msk.f32.vlgmr.msra.gmra.mxu0 %vm26_vm3, %v485_v32 }
  0x87   :  { %v118_v37 = vpop.permute.xlu0 %117 }
  0x88   :  { %vm119_vm4 = vcmp.eq.s32.totalorder %v115_v36, %v118_v37 }
  0x89   :  { %v379_v39 = vsel %vm119_vm4, 1.0, %v483_v2 }
  0xd0   :  { %v207_v34 = vpop.f32.mrf.mxu1 }
  0xd2   :  { %v462_v35 = vpop.f32.mrf.mxu1 }
 0x145   :  { %v111_v38 = vpop.f32.mrf.mxu0 }
 0x146   :  { %v127_v40 = vmul.f32 %v379_v39, %v111_v38 }
 0x147   :  { %v449_v41 = vpop.f32.mrf.mxu0 }
 0x148   :  { %468 = vmatmul.mubr.msk.f32.vlgmr.msra.gmra.mxu1 %vm211_vm5, %v127_v40 }
 0x149   :  { %472 = vmatprep.mubr.msk.f32.mxu1 %vm484_vm0, %v483_v2  ;;  %471 = vmatpush3.msk.msra.mxu1 %vm137_vm1, %v124_v42 }
 0x208   :  { %v281_v44 = vpop.f32.mrf.mxu1 }
 0x209   :  { %v282_v45 = vadd.f32 %v281_v44, %v207_v34 }
 0x20a   :  { %v469_v46 = vpop.f32.mrf.mxu1 }
 0x20b   :  { %v289_v47 = vadd.f32 %v383_v43, %v282_v45 }
 0x20d   :  { %v290_v48 = vmax.f32 %v289_v47, 0.0 }
 0x20f   :  { %473 = vmatmul.mubr.msk.f32.vlgmr.msra.gmra.mxu1 %vm295_vm6, %v290_v48 }
 0x2cf   :  { %v368_v50 = vpop.f32.mrf.mxu1 }
 0x2d0   :  { %v369_v51 = vadd.f32 %v384_v49, %v368_v50 }
 0x2d1   :  { %v474_v52 = vpop.f32.mrf.mxu1 }
 0x2d2   :  { %372 = vst.msk [vmem:[%s634_s4] sm:$0xff] %vm295_vm6, %v369_v51 }

</bundles_post_ra>
